<compile_context>
chip_gen: v7x
topology: tpu7x:2x2x1
jax: 0.10.0
libtpu: 0.0.40
codegen_flags: <defaults>
</compile_context>

<pallas_src>
import functools

import jax
import jax.numpy as jnp
from jax import lax
from jax.experimental import pallas as pl
from jax.experimental.pallas import tpu as pltpu


def _round_up(v, m):
    return -(-v // m) * m


def _round_down(v, m):
    return (v // m) * m


def _gap_kernel(x_ref, o_ref, acc_ref, *, inv_hw):
    """Grid = (row_blocks, hw_chunks); the hw_chunk axis is the reduction."""
    k = pl.program_id(1)

    @pl.when(k == 0)
    def _():
        acc_ref[...] = jnp.zeros_like(acc_ref)

    x = x_ref[...]                                     # (TR, HWC) tile
    ones = jnp.ones((1, x.shape[-1]), dtype=x.dtype)
    # (1, HWC) contracted with (TR, HWC) on the HWC axis -> (1, TR):
    # per-row partial sums, f32 accumulation on the MXU, lane-dense result.
    acc_ref[...] += lax.dot_general(
        ones, x,
        dimension_numbers=(((1,), (1,)), ((), ())),
        preferred_element_type=jnp.float32,
        precision=lax.Precision.HIGHEST,
    )

    @pl.when(k == pl.num_programs(1) - 1)
    def _():
        o_ref[0] = (acc_ref[...] * inv_hw).astype(o_ref.dtype)


def global_avg_pool(x, *, tile_bytes=8 * 1024 * 1024, min_row_steps=4):
    """Mean over the last two dims of x, computed in a Pallas TPU kernel."""
    if x.ndim < 2:
        raise ValueError("GlobalAvgPool expects rank >= 2 input")
    if not jnp.issubdtype(x.dtype, jnp.floating):
        # torch.mean also rejects integer dtypes.
        raise TypeError("GlobalAvgPool expects a floating-point input")

    lead = x.shape[:-2]
    H, W = x.shape[-2], x.shape[-1]
    R = 1
    for d in lead:
        R *= d
    HW = H * W

    itemsize = jnp.dtype(x.dtype).itemsize
    pack = 32 // itemsize        # sublane multiple: f32 -> 8, bf16 -> 16, 1B -> 32

    xr = x.reshape(R, HW)

    # ---- lane axis (HW): a single chunk unless even a `pack`-row tile would
    # blow the per-buffer budget; then split HW into balanced, 128-aligned
    # chunks and zero-pad the tail (zeros don't perturb the sums; we divide by
    # the true HW). ----
    if _round_up(HW, 128) * itemsize * pack > tile_bytes:
        target_cols = (128 * 1024) // itemsize                   # ~128 KiB rows
        num_hw_chunks = pl.cdiv(HW, target_cols)
        hwc = _round_up(pl.cdiv(HW, num_hw_chunks), 128)
        hw_pad = hwc * num_hw_chunks
        if hw_pad != HW:
            xr = jnp.pad(xr, ((0, 0), (0, hw_pad - HW)))
    else:
        hwc, hw_pad, num_hw_chunks = HW, HW, 1

    # ---- row axis (R): biggest sublane-aligned tile within the byte budget
    # (VMEM pads the lane axis to a multiple of 128), but keep >= min_row_steps
    # grid steps when each step still moves >= ~1 MiB (megacore on v7x). ----
    row_bytes = _round_up(hwc, 128) * itemsize
    tr = max(pack, _round_down(tile_bytes // row_bytes, pack))
    tr_parallel = max(pack, _round_down(_round_up(R, min_row_steps) // min_row_steps, pack))
    if tr_parallel * row_bytes >= (1 << 20):
        tr = min(tr, tr_parallel)
    tr = min(tr, R)
    num_row_blocks = pl.cdiv(R, tr)

    out = pl.pallas_call(
        functools.partial(_gap_kernel, inv_hw=1.0 / HW),
        out_shape=jax.ShapeDtypeStruct((num_row_blocks, 1, tr), x.dtype),
        grid=(num_row_blocks, num_hw_chunks),
        in_specs=[pl.BlockSpec((tr, hwc), lambda g, k: (g, k))],
        out_specs=pl.BlockSpec((1, 1, tr), lambda g, k: (g, 0, 0)),
        scratch_shapes=[pltpu.VMEM((1, tr), jnp.float32)],
        compiler_params=pltpu.CompilerParams(
            dimension_semantics=("parallel", "arbitrary"),
            vmem_limit_bytes=40 * 1024 * 1024),
        cost_estimate=pl.CostEstimate(
            flops=2 * R * hw_pad,
            transcendentals=0,
            bytes_accessed=R * hw_pad * itemsize + R * itemsize),
    )(xr)

    # (row_blocks, 1, TR) lane-dense slab -> first R entries -> leading shape.
    return out.reshape(num_row_blocks * tr)[:R].reshape(lead)


if __name__ == "__main__":
    key = jax.random.PRNGKey(0)
    # NCHW input, small shapes: batch=2, channels=4, spatial 16x16.
    x = jax.random.normal(key, (2, 4, 16, 16), dtype=jnp.float32)

    y = jax.block_until_ready(global_avg_pool(x))

    y_ref = jnp.mean(x, axis=(-2, -1))
    assert y.shape == y_ref.shape == (2, 4)
    # The f32 dot at HIGHEST precision matches the f32 reference to ~1e-6; the
    # tolerance is kept slightly loose to stay robust across TPU generations'
    # matmul-precision defaults.
    assert jnp.allclose(y, y_ref, atol=1e-3, rtol=1e-3)

    print("KERNEL_OK")
</pallas_src>

<mosaic_0001>
module attributes {stable_mosaic.version = 11 : i64} {
  func.func @_gap_kernel(%arg0: i32, %arg1: i32, %arg2: memref<8x256xf32, #tpu.memory_space<vmem>>, %arg3: memref<1x1x8xf32, #tpu.memory_space<vmem>>, %arg4: memref<1x8xf32, #tpu.memory_space<vmem>>) attributes {dimension_semantics = [#tpu.dimension_semantics<parallel>, #tpu.dimension_semantics<arbitrary>], iteration_bounds = array<i64: 1, 1>, scalar_prefetch = 0 : i64, scratch_operands = 1 : i64, tpu.core_type = #tpu.core_type<tc>, window_params = [{transform_indices = @transform_0, window_bounds = array<i64: 8, 256>}, {transform_indices = @transform_1, window_bounds = array<i64: 1, 1, 8>}]} {
    %c0_i32 = arith.constant 0 : i32
    %0 = arith.cmpi eq, %arg1, %c0_i32 : i32
    %1 = arith.extui %0 : i1 to i32
    %c0_i32_0 = arith.constant 0 : i32
    %2 = arith.cmpi ne, %1, %c0_i32_0 : i32
    scf.if %2 {
      %cst_9 = arith.constant 0.000000e+00 : f32
      %12 = vector.broadcast %cst_9 : f32 to vector<1x8xf32>
      %c0_10 = arith.constant 0 : index
      %c0_11 = arith.constant 0 : index
      %13 = vector.load %arg4[%c0_10, %c0_11] : memref<1x8xf32, #tpu.memory_space<vmem>>, vector<1x8xf32>
      tpu.vector_store %arg4[%c0_10, %c0_11], %12 {strides = array<i32>} : memref<1x8xf32, #tpu.memory_space<vmem>>, vector<1x8xf32>,
    } else {
    }
    %c0 = arith.constant 0 : index
    %c0_1 = arith.constant 0 : index
    %3 = vector.load %arg2[%c0, %c0_1] : memref<8x256xf32, #tpu.memory_space<vmem>>, vector<8x256xf32>
    %cst = arith.constant 1.000000e+00 : f32
    %4 = vector.broadcast %cst : f32 to vector<1x256xf32>
    %c0_2 = arith.constant 0 : index
    %c0_3 = arith.constant 0 : index
    %5 = vector.load %arg4[%c0_2, %c0_3] : memref<1x8xf32, #tpu.memory_space<vmem>>, vector<1x8xf32>
    %cst_4 = arith.constant dense<0.000000e+00> : vector<1x8xf32>
    %6 = tpu.matmul %4, %3, %cst_4 {dimension_numbers = #tpu.dot_dimension_numbers<[1], [1], [0], [0], [0, 0, 1, 0], [], []>, precision = #tpu.contract_precision<fp32>} : vector<1x256xf32>, vector<8x256xf32>, vector<1x8xf32> -> vector<1x8xf32>
    %7 = arith.addf %5, %6 : vector<1x8xf32>
    %c0_5 = arith.constant 0 : index
    %c0_6 = arith.constant 0 : index
    %8 = vector.load %arg4[%c0_5, %c0_6] : memref<1x8xf32, #tpu.memory_space<vmem>>, vector<1x8xf32>
    tpu.vector_store %arg4[%c0_5, %c0_6], %7 {strides = array<i32>} : memref<1x8xf32, #tpu.memory_space<vmem>>, vector<1x8xf32>,
    %c0_i32_7 = arith.constant 0 : i32
    %9 = arith.cmpi eq, %arg1, %c0_i32_7 : i32
    %10 = arith.extui %9 : i1 to i32
    %c0_i32_8 = arith.constant 0 : i32
    %11 = arith.cmpi ne, %10, %c0_i32_8 : i32
    scf.if %11 {
      %c0_9 = arith.constant 0 : index
      %c0_10 = arith.constant 0 : index
      %12 = vector.load %arg4[%c0_9, %c0_10] : memref<1x8xf32, #tpu.memory_space<vmem>>, vector<1x8xf32>
      %cst_11 = arith.constant 3.906250e-03 : f32
      %13 = vector.broadcast %cst_11 : f32 to vector<1x8xf32>
      %14 = arith.mulf %12, %13 : vector<1x8xf32>
      %c0_12 = arith.constant 0 : index
      %c0_13 = arith.constant 0 : index
      %c0_14 = arith.constant 0 : index
      %15 = vector.load %arg3[%c0_12, %c0_13, %c0_14] : memref<1x1x8xf32, #tpu.memory_space<vmem>>, vector<1x1x8xf32>
      %16 = vector.shape_cast %15 : vector<1x1x8xf32> to vector<1x8xf32>
      %17 = vector.shape_cast %14 : vector<1x8xf32> to vector<1x1x8xf32>
      tpu.vector_store %arg3[%c0_12, %c0_13, %c0_14], %17 {strides = array<i32>} : memref<1x1x8xf32, #tpu.memory_space<vmem>>, vector<1x1x8xf32>,
    } else {
    }
    return
  }
  func.func @transform_0(%arg0: i32, %arg1: i32) -> (i32, i32) {
    %c0_i32 = arith.constant 0 : i32
    return %arg0, %arg1 : i32, i32
  }
  func.func @transform_1(%arg0: i32, %arg1: i32) -> (i32, i32, i32) {
    %c0_i32 = arith.constant 0 : i32
    %c0_i32_0 = arith.constant 0 : i32
    %c0_i32_1 = arith.constant 0 : i32
    return %arg0, %c0_i32, %c0_i32_0 : i32, i32, i32
  }
}

</mosaic_0001>

<bundles_post_ra>
// kernel: tpu_custom_call.1
= control target key start
LH: loop header
LB: loop body
LE: loop exit
PB: predicated region body
PF: predicated region fallthrough
CT: control target
= control target key end

     0   :  { %6 = vsyncpa [#allocation4], 0  ;;  %s593_s0 = inlined_call_operand.hbm [shape: f32[8,256], index: 0, kind: input, shape index: {}]   ;;  %s594_s1 = inlined_call_operand.hbm [shape: f32[1,1,8], index: 1, kind: output, shape index: {}]  }
   0x1   :  { %7 = vsyncpa [#allocation5], 0  ;;  %s552_s6 = smov [#allocation3]   ;;  %s504_s10 = scalar_lea.hbm %s593_s0, 256 }
   0x2   :  { %s14_s7 = sshll.u32 %s552_s6, 4  ;;  %p505_p0 = scmp.ne.s32.totalorder %s593_s0, %s504_s10  ;;  %s15_s7 = int_to_ptr.vmem [resolvable:$true] %s14_s7 }
   0x3   :  { %p508_p1 = scmp.lt.u32.totalorder %s504_s10, %s593_s0 }
   0x5   :  { %p510_p2 = pnand %p508_p1, %p505_p0 }
   0x7   :  { %513 = shalt.err (!%p510_p2)
}
   0x8   :  { %s514_s15 = scalar_lea.vmem %s15_s7, 256  ;;  %p519_p4 = scmp.lt.s32.totalorder %s15_s7, %s15_s7 }
   0x9   :  { %p515_p3 = scmp.ne.s32.totalorder %s15_s7, %s514_s15  ;;  %p520_p5 = scmp.lt.s32.totalorder %s514_s15, %s514_s15 }
   0xb   :  { %p521_p6 = por %p520_p5, %p519_p4 }
   0xd   :  { %p522_p7 = pnand %p521_p6, %p515_p3 }
   0xf   :  { %525 = shalt.err (!%p522_p7)
}
  0x10   :  { %17 = dma.hbm_to_vmem [thread:$0]  %s593_s0, 256, %s15_s7, [#allocation4]  }
  0x11   :  { %548 = dma.done.wait [#allocation4], 256  }
  0x12   :  { %549 = vsyncadd [#allocation4], 4294967040  ;;  %v553_v0 = vmov 0.0   ;;  %v554_v1 = vmov 1.0   ;;  %v28_v2 = vld [vmem:[#allocation3 + $0x8] sm:$0xff]  ;;  %v27_v3 = vld [vmem:[#allocation3] sm:$0xff] }
  0x13   :  { %96 = vmatprep.mubr.f32.mxu0 %v553_v0  ;;  %176 = vmatprep.mubr.f32.mxu1 %v554_v1  ;;  %v30_v4 = vand.u32 4294901760, %v28_v2  ;;  %v32_v5 = vand.u32 4294901760, %v27_v3  ;;  %vm25_vm0 = vcmask 57344   ;;  %s555_s0 = smov [#allocation6]  }
  0x14   :  { %26 = vst.msk [vmem:[#allocation2] sm:$0x1] %vm25_vm0, %v553_v0  ;;  %s491_s18 = sshll.u32 %s555_s0, 4  ;;  %s492_s18 = int_to_ptr.vmem [resolvable:$true] %s491_s18 }
  0x15   :  { %31 = vmatprep.subr.mxu0 %v30_v4  ;;  %v103_v6 = vsub.f32 %v28_v2, %v30_v4  ;;  %v109_v7 = vsub.f32 %v27_v3, %v32_v5  ;;  %s526_s19 = scalar_lea.vmem %s492_s18, 16  ;;  %s530_s20 = scalar_lea.vmem %s492_s18, 32 }
  0x16   :  { %33 = vmatpush1.xpose.msra.mxu0 %v32_v5  ;;  %p527_p8 = scmp.ne.s32.totalorder %s492_s18, %s526_s19  ;;  %p531_p9 = scmp.lt.s32.totalorder %s492_s18, %s492_s18 }
  0x17   :  { %v104_v8 = vand.u32 4294901760, %v103_v6  ;;  %v110_v9 = vand.u32 4294901760, %v109_v7  ;;  %184 = vmatprep.subr.mxu0 %v103_v6  ;;  %p532_p10 = scmp.lt.s32.totalorder %s530_s20, %s526_s19 }
  0x19   :  { %v105_v10 = vsub.f32 %v103_v6, %v104_v8  ;;  %v111_v11 = vsub.f32 %v109_v7, %v110_v9  ;;  %97 = vmatmul.mubr.f32.vlgmr.msra.gmra.mrb[0].mxu0 %v553_v0  ;;  %p533_p11 = por %p532_p10, %p531_p9 }
  0x1a   :  { %187 = vmatpush1.xpose.msra.mxu0 %v109_v7  ;;  %250 = vmatprep.mubr.f32.mxu0 %v553_v0 }
  0x1b   :  { %v106_v12 = vand.u32 4294901760, %v105_v10  ;;  %v112_v13 = vand.u32 4294901760, %v111_v11  ;;  %331 = vmatprep.subr.mxu0 %v104_v8  ;;  %v29_v28 = vld [vmem:[#allocation2] sm:$0x1]  ;;  %p534_p12 = pnand %p533_p11, %p527_p8 }
  0x1d   :  { %107 = vmatprep.subr.mxu1 %v106_v12  ;;  %251 = vmatmul.mubr.f32.vlgmr.msra.gmra.mrb[2].mxu0 %v553_v0 }
  0x1e   :  { %113 = vmatpush1.xpose.msra.mxu1 %v112_v13  ;;  %335 = vmatpush1.xpose.msra.mxu0 %v110_v9 }
  0x1f   :  { %257 = vmatprep.subr.mxu1 %v30_v4  ;;  %398 = vmatprep.mubr.f32.mxu0 %v554_v1 }
  0x21   :  { %177 = vmatmul.mubr.f32.vlgmr.msra.gmra.mrb[0].mxu1 %v554_v1  ;;  %399 = vmatmul.mubr.f32.vlgmr.msra.gmra.mrb[4].mxu0 %v554_v1 }
  0x22   :  { %259 = vmatpush1.xpose.msra.mxu1 %v32_v5  ;;  %322 = vmatprep.mubr.f32.mxu1 %v553_v0 }
  0x23   :  { %405 = vmatprep.subr.mxu1 %v30_v4 }
  0x25   :  { %323 = vmatmul.mubr.f32.vlgmr.msra.gmra.mrb[2].mxu1 %v553_v0 }
  0x26   :  { %407 = vmatpush1.xpose.msra.mxu1 %v32_v5  ;;  %470 = vmatprep.mubr.f32.mxu1 %v554_v1 }
  0x29   :  { %471 = vmatmul.mubr.f32.vlgmr.msra.gmra.mrb[4].mxu1 %v554_v1 }
  0xec   :  { %v98_v14 = vpop.f32.mrb[0].mxu0 }
  0xed   :  { %v100_v15 = vpop.f32.mrb[1].mxu0 }
  0xf0   :  { %v252_v16 = vpop.f32.mrb[2].mxu0 }
  0xf1   :  { %v254_v17 = vpop.f32.mrb[3].mxu0 }
  0xf4   :  { %v178_v18 = vpop.f32.mrb[0].mxu1  ;;  %v400_v19 = vpop.f32.mrb[4].mxu0 }
  0xf5   :  { %v179_v20 = vadd.f32 %v178_v18, %v98_v14  ;;  %v180_v21 = vpop.f32.mrb[1].mxu1  ;;  %v402_v22 = vpop.f32.mrb[5].mxu0 }
  0xf7   :  { %v253_v23 = vadd.f32 %v252_v16, %v179_v20 }
  0xf8   :  { %v324_v24 = vpop.f32.mrb[2].mxu1 }
  0xf9   :  { %v325_v25 = vadd.f32 %v324_v24, %v253_v23  ;;  %v326_v26 = vpop.f32.mrb[3].mxu1 }
  0xfb   :  { %v401_v27 = vadd.f32 %v400_v19, %v325_v25 }
  0xfc   :  { %v472_v29 = vpop.f32.mrb[4].mxu1 }
  0xfd   :  { %v473_v30 = vadd.f32 %v472_v29, %v401_v27  ;;  %v474_v31 = vpop.f32.mrb[5].mxu1 }
  0xff   :  { %v476_v32 = vadd.f32 %v473_v30, %v29_v28 }
 0x101   :  { %478 = vst.msk [vmem:[#allocation2] sm:$0x1] %vm25_vm0, %v476_v32 }
 0x108   :  { %v482_v33 = vld [vmem:[#allocation2] sm:$0x1] }
 0x109   :  { %v483_v34 = vmul.f32 0.00390625, %v482_v33 }
 0x10b   :  { %484 = vst.msk [vmem:[#allocation6] sm:$0x1] %vm25_vm0, %v483_v34 }
 0x10c   :  { %537 = shalt.err (!%p534_p12)
}
 0x10d   :  { %s538_s23 = scalar_lea.hbm %s594_s1, 16 }
 0x10e   :  { %p539_p13 = scmp.ne.s32.totalorder %s594_s1, %s538_s23  ;;  %p542_p0 = scmp.lt.u32.totalorder %s538_s23, %s594_s1 }
 0x110   :  { %p544_p1 = pnand %p542_p0, %p539_p13 }
 0x112   :  { %547 = shalt.err (!%p544_p1)
}
 0x113   :  { %494 = dma.vmem_to_hbm [thread:$0]  %s492_s18, 16, %s594_s1, [#allocation5]  }
 0x114   :  { %550 = dma.done.wait [#allocation5], 16  }
 0x115   :  { %551 = vsyncadd [#allocation5], 4294967280 }
 0x116   :  { %498 = vsyncpa [#allocation4], 1 }
 0x117   :  { %499 = vsyncpa [#allocation5], 1 }

</bundles_post_ra>
